<compile_context>
chip_gen: v7x
topology: tpu7x:2x2x1
jax: 0.10.0
libtpu: 0.0.40
codegen_flags: <defaults>
</compile_context>

<pallas_src>
import functools

import jax
import jax.numpy as jnp
from jax.experimental import pallas as pl
from jax.experimental.pallas import tpu as pltpu

_LANE = 128


def _round_up(v, m):
    return (v + m - 1) // m * m


def _choose_tile(dim, cap):
    """Largest tile <= cap that divides dim (multiple of 8 when actually tiling)."""
    if dim <= cap:
        return dim
    t = (cap // 8) * 8
    while t >= 8:
        if dim % t == 0:
            return t
        t -= 8
    return dim


def _pad_axis(x, axis, target):
    pad = target - x.shape[axis]
    if pad <= 0:
        return x
    widths = [(0, 0)] * x.ndim
    widths[axis] = (0, pad)
    return jnp.pad(x, widths)


def _extract_patches(x, patch, out_dtype=jnp.bfloat16):
    """NCHW image -> (B, N_patches, C*patch*patch). Plain-JAX glue.

    Cast to the compute dtype *before* the 6-D transpose so the glue only moves
    half the bytes through HBM.
    """
    B, C, H, W = x.shape
    nh, nw = H // patch, W // patch
    x = x.astype(out_dtype)
    x = x.reshape(B, C, nh, patch, nw, patch)
    x = jnp.transpose(x, (0, 2, 4, 1, 3, 5))          # (B, nh, nw, C, ph, pw)
    return x.reshape(B, nh * nw, C * patch * patch)


def _tpu_config():
    """Generation-aware knobs: (vmem_limit_bytes, bf16_elementwise, mxu_lane, two_cores)."""
    kind = ""
    try:
        kind = jax.devices()[0].device_kind.lower()
    except Exception:
        pass
    old_gen = any(g in kind for g in ("v2", "v3", "v4", "v5"))
    is_v7 = ("v7" in kind) or ("7x" in kind)

    vmem_cap = None
    try:
        info = pltpu.get_tpu_info()
        for name in ("vmem_capacity_bytes", "vmem_bytes", "vmem_capacity"):
            v = getattr(info, name, None)
            if v:
                vmem_cap = int(v)
                break
    except Exception:
        vmem_cap = None
    if vmem_cap is None:
        # Fall back on the device-kind string (64 MiB per TC on v7x, 128 MiB else).
        vmem_cap = (64 if is_v7 else 128) * 1024 * 1024

    # Leave compiler headroom: never hand Mosaic the full physical VMEM.
    vmem_limit = min(int(vmem_cap * 0.75), 112 * 1024 * 1024)
    vmem_limit = max(vmem_limit, 32 * 1024 * 1024)

    bf16_elem = not old_gen               # v5e VPU/EUP have no bf16 path
    mxu_lane = 128 if old_gen else 256    # v6e/v7x MXUs are 2x256x256
    two_cores = is_v7                     # v7x: 2 TensorCores per chip
    return vmem_limit, bf16_elem, mxu_lane, two_cores


def _pick_tiles(B, N, Kp, Dp, Cp, vmem_limit, bf16_elem, two_cores):
    """Pick (tb, tn) against the VMEM budget."""
    # Batch tile: big enough to feed the finalize (tb,Dp)@(Dp,Cp) matmul more
    # than 8 MXU rows, but keep >=2 batch grid steps on dual-TC parts.
    tb_cap = 64
    if two_cores and B >= 16:
        tb_cap = min(tb_cap, B // 2)
    tb = _choose_tile(B, tb_cap)

    # Patch-chunk tile: biggest multiple of 8 whose working set (double-buffered
    # bf16 patches + f32 matmul output + GELU intermediate) fits ~70% of the
    # VMEM limit after resident weights / accumulator / outputs are counted.
    elem_bytes = 2 if bf16_elem else 4
    fixed = (Kp * Dp * 2 + Dp * Cp * 2 + Dp * 4 + Cp * 4   # single-buffered weights/biases
             + tb * Dp * 4                                  # pooled-sum accumulator
             + 2 * tb * Cp * 4)                             # double-buffered output
    budget = int(vmem_limit * 0.7) - fixed
    per_row = tb * (2 * Kp * 2                              # patches (bf16, 2 buffers)
                    + Dp * 4 + Dp * elem_bytes)             # matmul out + GELU intermediate
    tn = 8
    t = min(512, _round_up(N, 8))
    while t >= 8:
        if per_row * t <= budget:
            tn = t
            break
        t -= 8
    return tb, max(tn, 8)


def _resident_spec(shape):
    """Constant-index weight/bias block: single-buffered to save VMEM."""
    index_map = lambda bi, ni: (0,) * len(shape)
    try:
        return pl.BlockSpec(shape, index_map, pipeline_mode=pl.Buffered(1))
    except Exception:  # pipeline_mode unavailable -> default double-buffering
        return pl.BlockSpec(shape, index_map)


def _classifier_kernel(patches_ref, w_emb_ref, b_emb_ref, w_cls_ref, b_cls_ref,
                       o_ref, acc_ref, *, n_total, n_pad, bf16_elem):
    """Per grid step: bf16 matmul + GELU, pooled-sum accumulate; finalize last."""
    ni = pl.program_id(1)

    @pl.when(ni == 0)
    def _():
        acc_ref[...] = jnp.zeros_like(acc_ref)

    tb, tn, kp = patches_ref.shape
    dp = acc_ref.shape[-1]

    # Flattened (tb*tn, Kp) @ (Kp, Dp): bf16 operands, f32 MXU accumulation.
    p = patches_ref[...].reshape(tb * tn, kp)
    emb = jnp.dot(p, w_emb_ref[...], preferred_element_type=jnp.float32)

    # Bias + GELU: bf16 on parts with a bf16 VPU/EUP (v6e/v7x), f32 on v5e.
    if bf16_elem:
        emb = emb.astype(jnp.bfloat16)
    h = jax.nn.gelu(emb + b_emb_ref[...], approximate=True)
    h = h.reshape(tb, tn, dp).astype(jnp.float32)

    if n_pad != n_total:
        # Mask tail rows introduced by padding N up to a multiple of tn so the
        # pooled sum only counts real patches (bias makes padded rows nonzero).
        row = jax.lax.broadcasted_iota(jnp.int32, (1, tn, 1), 1) + ni * tn
        h = jnp.where(row < n_total, h, 0.0)

    # Accumulate the pooled sum tile-by-tile; no full (B, N, D) activation.
    acc_ref[...] += h.sum(axis=1)

    @pl.when(ni == pl.num_programs(1) - 1)
    def _():
        pooled = acc_ref[...] * (1.0 / n_total)            # (tb, Dp) f32 mean
        logits = jnp.dot(pooled.astype(w_cls_ref.dtype), w_cls_ref[...],
                         preferred_element_type=jnp.float32)
        o_ref[...] = (logits + b_cls_ref[...]).astype(o_ref.dtype)


@functools.partial(jax.jit, static_argnames=("patch",))
def wrapped_model_forward(x, w_emb, b_emb, w_cls, b_cls, *, patch):
    vmem_limit, bf16_elem, mxu_lane, two_cores = _tpu_config()

    patches = _extract_patches(x, patch, jnp.bfloat16)     # (B, N, K) bf16
    B, N, K = patches.shape
    D = w_emb.shape[1]
    C = w_cls.shape[1]

    # Lane-dense padding: K to 128; D/C to the MXU width (256 on v6e/v7x,
    # 128 on v5e).  Zero pads are matmul-neutral and gelu(0) == 0, so padded
    # columns stay exactly zero; padded classes are sliced off below.
    Kp = _round_up(K, _LANE)
    Dp = _round_up(D, mxu_lane)
    Cp = _round_up(C, mxu_lane)

    tb, tn = _pick_tiles(B, N, Kp, Dp, Cp, vmem_limit, bf16_elem, two_cores)
    N_pad = _round_up(N, tn)          # keeps tn a multiple of 8, grid exact

    elem_dtype = jnp.bfloat16 if bf16_elem else jnp.float32
    patches_p = _pad_axis(_pad_axis(patches, 2, Kp), 1, N_pad)
    w_emb_p = _pad_axis(_pad_axis(w_emb, 0, Kp), 1, Dp).astype(jnp.bfloat16)
    b_emb_p = _pad_axis(b_emb, 1, Dp).astype(elem_dtype)
    w_cls_p = _pad_axis(_pad_axis(w_cls, 0, Dp), 1, Cp).astype(jnp.bfloat16)
    b_cls_p = _pad_axis(b_cls, 1, Cp).astype(jnp.float32)

    grid = (B // tb, N_pad // tn)     # batch parallel, patch-chunk reduction last

    out_padded = pl.pallas_call(
        functools.partial(_classifier_kernel, n_total=N, n_pad=N_pad,
                          bf16_elem=bf16_elem),
        out_shape=jax.ShapeDtypeStruct((B, Cp), jnp.float32),
        grid_spec=pltpu.PrefetchScalarGridSpec(
            num_scalar_prefetch=0,
            grid=grid,
            in_specs=[
                pl.BlockSpec((tb, tn, Kp), lambda bi, ni: (bi, ni, 0)),
                _resident_spec((Kp, Dp)),
                _resident_spec((1, Dp)),
                _resident_spec((Dp, Cp)),
                _resident_spec((1, Cp)),
            ],
            out_specs=pl.BlockSpec((tb, Cp), lambda bi, ni: (bi, 0)),
            scratch_shapes=[pltpu.VMEM((tb, Dp), jnp.float32)],
        ),
        compiler_params=pltpu.CompilerParams(
            dimension_semantics=("parallel", "arbitrary"),
            vmem_limit_bytes=vmem_limit),
    )(patches_p, w_emb_p, b_emb_p, w_cls_p, b_cls_p)

    return out_padded[:, :C]


def _reference_forward(x, w_emb, b_emb, w_cls, b_cls, patch, bf16_elem):
    """Pure-JAX reference following the same dtype path as the kernel."""
    patches = _extract_patches(x, patch, jnp.bfloat16)
    B, N, K = patches.shape
    emb = jnp.dot(patches.reshape(-1, K), w_emb.astype(jnp.bfloat16),
                  preferred_element_type=jnp.float32).reshape(B, N, -1)
    if bf16_elem:
        h = jax.nn.gelu(emb.astype(jnp.bfloat16) + b_emb.astype(jnp.bfloat16),
                        approximate=True).astype(jnp.float32)
    else:
        h = jax.nn.gelu(emb + b_emb, approximate=True)
    pooled = jnp.mean(h, axis=1)
    return jnp.dot(pooled.astype(jnp.bfloat16), w_cls.astype(jnp.bfloat16),
                   preferred_element_type=jnp.float32) + b_cls


if __name__ == "__main__":
    # Small shapes consistent with an image-classification forward.
    B, C, H, W = 2, 4, 16, 16
    PATCH = 4
    D = 32            # hidden / embedding dim
    NUM_CLASSES = 16

    key = jax.random.PRNGKey(0)
    k_x, k_we, k_be, k_wc, k_bc = jax.random.split(key, 5)

    x = jax.random.normal(k_x, (B, C, H, W), dtype=jnp.float32)

    K = C * PATCH * PATCH
    w_emb = jax.random.normal(k_we, (K, D), dtype=jnp.float32) * 0.05
    b_emb = jax.random.normal(k_be, (1, D), dtype=jnp.float32) * 0.01
    w_cls = jax.random.normal(k_wc, (D, NUM_CLASSES), dtype=jnp.float32) * 0.05
    b_cls = jax.random.normal(k_bc, (1, NUM_CLASSES), dtype=jnp.float32) * 0.01

    logits = wrapped_model_forward(x, w_emb, b_emb, w_cls, b_cls, patch=PATCH)
    jax.block_until_ready(logits)

    _, bf16_elem, _, _ = _tpu_config()
    ref = _reference_forward(x, w_emb, b_emb, w_cls, b_cls, PATCH, bf16_elem)

    assert logits.shape == (B, NUM_CLASSES)
    assert jnp.allclose(logits, ref, atol=5e-3, rtol=2e-2), (
        float(jnp.max(jnp.abs(logits - ref))))

    print("KERNEL_OK")
</pallas_src>

<mosaic_0001>
module attributes {stable_mosaic.version = 11 : i64} {
  func.func @_classifier_kernel(%arg0: i32, %arg1: i32, %arg2: memref<2x16x128xbf16, #tpu.memory_space<vmem>>, %arg3: memref<128x256xbf16, #tpu.memory_space<vmem>>, %arg4: memref<1x256xbf16, #tpu.memory_space<vmem>>, %arg5: memref<256x256xbf16, #tpu.memory_space<vmem>>, %arg6: memref<1x256xf32, #tpu.memory_space<vmem>>, %arg7: memref<2x256xf32, #tpu.memory_space<vmem>>, %arg8: memref<2x256xf32, #tpu.memory_space<vmem>>) attributes {dimension_semantics = [#tpu.dimension_semantics<parallel>, #tpu.dimension_semantics<arbitrary>], iteration_bounds = array<i64: 1, 1>, scalar_prefetch = 0 : i64, scratch_operands = 1 : i64, tpu.core_type = #tpu.core_type<tc>, window_params = [{transform_indices = @transform_0, window_bounds = array<i64: 2, 16, 128>}, {pipeline_mode = #tpu.pipeline_mode<synchronous>, transform_indices = @transform_1, window_bounds = array<i64: 128, 256>}, {pipeline_mode = #tpu.pipeline_mode<synchronous>, transform_indices = @transform_2, window_bounds = array<i64: 1, 256>}, {pipeline_mode = #tpu.pipeline_mode<synchronous>, transform_indices = @transform_3, window_bounds = array<i64: 256, 256>}, {pipeline_mode = #tpu.pipeline_mode<synchronous>, transform_indices = @transform_4, window_bounds = array<i64: 1, 256>}, {transform_indices = @transform_5, window_bounds = array<i64: 2, 256>}]} {
    %c0_i32 = arith.constant 0 : i32
    %0 = arith.cmpi eq, %arg1, %c0_i32 : i32
    %1 = arith.extui %0 : i1 to i32
    %c0_i32_0 = arith.constant 0 : i32
    %2 = arith.cmpi ne, %1, %c0_i32_0 : i32
    scf.if %2 {
      %cst_18 = arith.constant 0.000000e+00 : f32
      %33 = vector.broadcast %cst_18 : f32 to vector<2x256xf32>
      %c0_19 = arith.constant 0 : index
      %c0_20 = arith.constant 0 : index
      %34 = vector.load %arg8[%c0_19, %c0_20] : memref<2x256xf32, #tpu.memory_space<vmem>>, vector<2x256xf32>
      tpu.vector_store %arg8[%c0_19, %c0_20], %33 {strides = array<i32>} : memref<2x256xf32, #tpu.memory_space<vmem>>, vector<2x256xf32>,
    } else {
    }
    %c0 = arith.constant 0 : index
    %c0_1 = arith.constant 0 : index
    %c0_2 = arith.constant 0 : index
    %3 = vector.load %arg2[%c0, %c0_1, %c0_2] : memref<2x16x128xbf16, #tpu.memory_space<vmem>>, vector<2x16x128xbf16>
    %4 = vector.shape_cast %3 : vector<2x16x128xbf16> to vector<32x128xbf16>
    %c0_3 = arith.constant 0 : index
    %c0_4 = arith.constant 0 : index
    %5 = vector.load %arg3[%c0_3, %c0_4] : memref<128x256xbf16, #tpu.memory_space<vmem>>, vector<128x256xbf16>
    %cst = arith.constant dense<0.000000e+00> : vector<32x256xf32>
    %6 = tpu.matmul %4, %5, %cst {dimension_numbers = #tpu.dot_dimension_numbers<[1], [0], [0], [1], [0, 0, 1, 1], [], []>} : vector<32x128xbf16>, vector<128x256xbf16>, vector<32x256xf32> -> vector<32x256xf32>
    %7 = arith.truncf %6 : vector<32x256xf32> to vector<32x256xbf16>
    %c0_5 = arith.constant 0 : index
    %c0_6 = arith.constant 0 : index
    %8 = vector.load %arg4[%c0_5, %c0_6] : memref<1x256xbf16, #tpu.memory_space<vmem>>, vector<1x256xbf16>
    %9 = vector.broadcast %8 : vector<1x256xbf16> to vector<32x256xbf16>
    %10 = arith.addf %7, %9 : vector<32x256xbf16>
    %11 = arith.mulf %10, %10 : vector<32x256xbf16>
    %12 = arith.mulf %10, %11 : vector<32x256xbf16>
    %cst_7 = arith.constant 4.467770e-02 : bf16
    %13 = vector.broadcast %cst_7 : bf16 to vector<32x256xbf16>
    %14 = arith.mulf %13, %12 : vector<32x256xbf16>
    %15 = arith.addf %10, %14 : vector<32x256xbf16>
    %cst_8 = arith.constant 7.968750e-01 : bf16
    %16 = vector.broadcast %cst_8 : bf16 to vector<32x256xbf16>
    %17 = arith.mulf %16, %15 : vector<32x256xbf16>
    %18 = math.tanh %17 : vector<32x256xbf16>
    %cst_9 = arith.constant 1.000000e+00 : bf16
    %19 = vector.broadcast %cst_9 : bf16 to vector<32x256xbf16>
    %20 = arith.addf %19, %18 : vector<32x256xbf16>
    %cst_10 = arith.constant 5.000000e-01 : bf16
    %21 = vector.broadcast %cst_10 : bf16 to vector<32x256xbf16>
    %22 = arith.mulf %21, %20 : vector<32x256xbf16>
    %23 = arith.mulf %10, %22 : vector<32x256xbf16>
    %24 = vector.shape_cast %23 : vector<32x256xbf16> to vector<2x16x256xbf16>
    %25 = arith.extf %24 : vector<2x16x256xbf16> to vector<2x16x256xf32>
    %c0_11 = arith.constant 0 : index
    %c0_12 = arith.constant 0 : index
    %26 = vector.load %arg8[%c0_11, %c0_12] : memref<2x256xf32, #tpu.memory_space<vmem>>, vector<2x256xf32>
    %cst_13 = arith.constant dense<0.000000e+00> : vector<2x256xf32>
    %27 = vector.multi_reduction <add>, %25, %cst_13 [1] : vector<2x16x256xf32> to vector<2x256xf32>
    %28 = arith.addf %26, %27 : vector<2x256xf32>
    %c0_14 = arith.constant 0 : index
    %c0_15 = arith.constant 0 : index
    %29 = vector.load %arg8[%c0_14, %c0_15] : memref<2x256xf32, #tpu.memory_space<vmem>>, vector<2x256xf32>
    tpu.vector_store %arg8[%c0_14, %c0_15], %28 {strides = array<i32>} : memref<2x256xf32, #tpu.memory_space<vmem>>, vector<2x256xf32>,
    %c0_i32_16 = arith.constant 0 : i32
    %30 = arith.cmpi eq, %arg1, %c0_i32_16 : i32
    %31 = arith.extui %30 : i1 to i32
    %c0_i32_17 = arith.constant 0 : i32
    %32 = arith.cmpi ne, %31, %c0_i32_17 : i32
    scf.if %32 {
      %c0_18 = arith.constant 0 : index
      %c0_19 = arith.constant 0 : index
      %33 = vector.load %arg8[%c0_18, %c0_19] : memref<2x256xf32, #tpu.memory_space<vmem>>, vector<2x256xf32>
      %cst_20 = arith.constant 6.250000e-02 : f32
      %34 = vector.broadcast %cst_20 : f32 to vector<2x256xf32>
      %35 = arith.mulf %33, %34 : vector<2x256xf32>
      %36 = arith.truncf %35 : vector<2x256xf32> to vector<2x256xbf16>
      %c0_21 = arith.constant 0 : index
      %c0_22 = arith.constant 0 : index
      %37 = vector.load %arg5[%c0_21, %c0_22] : memref<256x256xbf16, #tpu.memory_space<vmem>>, vector<256x256xbf16>
      %cst_23 = arith.constant dense<0.000000e+00> : vector<2x256xf32>
      %38 = tpu.matmul %36, %37, %cst_23 {dimension_numbers = #tpu.dot_dimension_numbers<[1], [0], [0], [1], [0, 0, 1, 1], [], []>} : vector<2x256xbf16>, vector<256x256xbf16>, vector<2x256xf32> -> vector<2x256xf32>
      %c0_24 = arith.constant 0 : index
      %c0_25 = arith.constant 0 : index
      %39 = vector.load %arg6[%c0_24, %c0_25] : memref<1x256xf32, #tpu.memory_space<vmem>>, vector<1x256xf32>
      %40 = vector.broadcast %39 : vector<1x256xf32> to vector<2x256xf32>
      %41 = arith.addf %38, %40 : vector<2x256xf32>
      %c0_26 = arith.constant 0 : index
      %c0_27 = arith.constant 0 : index
      %42 = vector.load %arg7[%c0_26, %c0_27] : memref<2x256xf32, #tpu.memory_space<vmem>>, vector<2x256xf32>
      tpu.vector_store %arg7[%c0_26, %c0_27], %41 {strides = array<i32>} : memref<2x256xf32, #tpu.memory_space<vmem>>, vector<2x256xf32>,
    } else {
    }
    return
  }
  func.func @transform_0(%arg0: i32, %arg1: i32) -> (i32, i32, i32) {
    %c0_i32 = arith.constant 0 : i32
    %c0_i32_0 = arith.constant 0 : i32
    return %arg0, %arg1, %c0_i32 : i32, i32, i32
  }
  func.func @transform_1(%arg0: i32, %arg1: i32) -> (i32, i32) {
    %c0_i32 = arith.constant 0 : i32
    %c0_i32_0 = arith.constant 0 : i32
    %c0_i32_1 = arith.constant 0 : i32
    return %c0_i32, %c0_i32_0 : i32, i32
  }
  func.func @transform_2(%arg0: i32, %arg1: i32) -> (i32, i32) {
    %c0_i32 = arith.constant 0 : i32
    %c0_i32_0 = arith.constant 0 : i32
    %c0_i32_1 = arith.constant 0 : i32
    return %c0_i32, %c0_i32_0 : i32, i32
  }
  func.func @transform_3(%arg0: i32, %arg1: i32) -> (i32, i32) {
    %c0_i32 = arith.constant 0 : i32
    %c0_i32_0 = arith.constant 0 : i32
    %c0_i32_1 = arith.constant 0 : i32
    return %c0_i32, %c0_i32_0 : i32, i32
  }
  func.func @transform_4(%arg0: i32, %arg1: i32) -> (i32, i32) {
    %c0_i32 = arith.constant 0 : i32
    %c0_i32_0 = arith.constant 0 : i32
    %c0_i32_1 = arith.constant 0 : i32
    return %c0_i32, %c0_i32_0 : i32, i32
  }
  func.func @transform_5(%arg0: i32, %arg1: i32) -> (i32, i32) {
    %c0_i32 = arith.constant 0 : i32
    %c0_i32_0 = arith.constant 0 : i32
    return %arg0, %c0_i32 : i32, i32
  }
}

</mosaic_0001>

<bundles_post_ra>
// kernel: wrapped_model_forward.1
= control target key start
LH: loop header
LB: loop body
LE: loop exit
PB: predicated region body
PF: predicated region fallthrough
CT: control target
= control target key end

     0   :  { %10 = vsyncpa [#allocation4], 0  ;;  %s1122_s0 = inlined_call_operand.hbm [shape: bf16[2,16,128], index: 0, kind: input, shape index: {}]   ;;  %s1123_s1 = inlined_call_operand.hbm [shape: bf16[128,256], index: 1, kind: input, shape index: {}]   ;;  %s1124_s2 = inlined_call_operand.hbm [shape: bf16[1,256], index: 2, kind: input, shape index: {}]   ;;  %s1125_s3 = inlined_call_operand.hbm [shape: bf16[256,256], index: 3, kind: input, shape index: {}]   ;;  %s1126_s4 = inlined_call_operand.hbm [shape: f32[1,256], index: 4, kind: input, shape index: {}]   ;;  %s1127_s5 = inlined_call_operand.hbm [shape: f32[2,256], index: 5, kind: output, shape index: {}]  }
   0x1   :  { %11 = vsyncpa [#allocation7], 0 }
   0x2   :  { %12 = vsyncpa [#allocation10], 0 }
   0x3   :  { %13 = vsyncpa [#allocation5], 0  ;;  %s995_s18 = smov [#allocation6]   ;;  %s855_s22 = scalar_lea.hbm %s1123_s1, 2048 }
   0x4   :  { %s31_s19 = sshll.u32 %s995_s18, 4  ;;  %p856_p0 = scmp.ne.s32.totalorder %s1123_s1, %s855_s22  ;;  %s32_s19 = int_to_ptr.vmem [resolvable:$true] %s31_s19 }
   0x5   :  { %p859_p1 = scmp.lt.u32.totalorder %s855_s22, %s1123_s1 }
   0x7   :  { %p861_p2 = pnand %p859_p1, %p856_p0 }
   0x9   :  { %864 = shalt.err (!%p861_p2)
}
   0xa   :  { %s865_s27 = scalar_lea.vmem %s32_s19, 2048  ;;  %p870_p4 = scmp.lt.s32.totalorder %s32_s19, %s32_s19 }
   0xb   :  { %p866_p3 = scmp.ne.s32.totalorder %s32_s19, %s865_s27  ;;  %p871_p5 = scmp.lt.s32.totalorder %s865_s27, %s865_s27 }
   0xd   :  { %p872_p6 = por %p871_p5, %p870_p4 }
   0xf   :  { %p873_p7 = pnand %p872_p6, %p866_p3 }
  0x11   :  { %876 = shalt.err (!%p873_p7)
}
  0x12   :  { %s996_s28 = smov 128   ;;  %s997_s29 = smov 8  }
  0x13   :  { %37 = dma.hbm_to_vmem [thread:$0]  %s1123_s1, 2048, %s32_s19, [#allocation7], %s996_s28, %s996_s28, %s997_s29  }
  0x14   :  { %s998_s7 = smov [#allocation9]   ;;  %s999_s9 = smov [#allocation3]  }
  0x15   :  { %s53_s8 = sshll.u32 %s998_s7, 4  ;;  %s19_s10 = sshll.u32 %s999_s9, 4  ;;  %s54_s8 = int_to_ptr.vmem [resolvable:$true] %s53_s8  ;;  %s20_s10 = int_to_ptr.vmem [resolvable:$true] %s19_s10 }
  0x16   :  { %s877_s13 = scalar_lea.hbm %s1125_s3, 4096 }
  0x17   :  { %p878_p8 = scmp.ne.s32.totalorder %s1125_s3, %s877_s13  ;;  %p881_p9 = scmp.lt.u32.totalorder %s877_s13, %s1125_s3 }
  0x19   :  { %p883_p10 = pnand %p881_p9, %p878_p8 }
  0x1b   :  { %886 = shalt.err (!%p883_p10)
}
  0x1c   :  { %s887_s1 = scalar_lea.vmem %s54_s8, 4096  ;;  %p892_p12 = scmp.lt.s32.totalorder %s54_s8, %s54_s8 }
  0x1d   :  { %p888_p11 = scmp.ne.s32.totalorder %s54_s8, %s887_s1  ;;  %p893_p13 = scmp.lt.s32.totalorder %s887_s1, %s887_s1 }
  0x1f   :  { %p894_p0 = por %p893_p13, %p892_p12 }
  0x21   :  { %p895_p1 = pnand %p894_p0, %p888_p11 }
  0x23   :  { %898 = shalt.err (!%p895_p1)
}
  0x24   :  { %59 = dma.hbm_to_vmem [thread:$0]  %s1125_s3, 4096, %s54_s8, [#allocation10], %s996_s28, %s996_s28, %s997_s29  }
  0x25   :  { %s899_s22 = scalar_lea.hbm %s1122_s0, 256 }
  0x26   :  { %p900_p2 = scmp.ne.s32.totalorder %s1122_s0, %s899_s22  ;;  %p903_p3 = scmp.lt.u32.totalorder %s899_s22, %s1122_s0 }
  0x28   :  { %p905_p4 = pnand %p903_p3, %p900_p2 }
  0x2a   :  { %908 = shalt.err (!%p905_p4)
}
  0x2b   :  { %s909_s27 = scalar_lea.vmem %s20_s10, 256  ;;  %p914_p6 = scmp.lt.s32.totalorder %s20_s10, %s20_s10 }
  0x2c   :  { %p910_p5 = scmp.ne.s32.totalorder %s20_s10, %s909_s27  ;;  %p915_p7 = scmp.lt.s32.totalorder %s909_s27, %s909_s27 }
  0x2e   :  { %p916_p8 = por %p915_p7, %p914_p6 }
  0x30   :  { %p917_p9 = pnand %p916_p8, %p910_p5 }
  0x32   :  { %920 = shalt.err (!%p917_p9)
}
  0x33   :  { %s1000_s3 = smov 64   ;;  %s1001_s28 = smov 4  }
  0x34   :  { %25 = dma.hbm_to_vmem [thread:$0]  %s1122_s0, 256, %s20_s10, [#allocation4], %s1000_s3, %s1000_s3, %s1001_s28  }
  0x35   :  { %s1002_s6 = smov [#allocation8]   ;;  %s1003_s8 = smov [#allocation11]  }
  0x36   :  { %s44_s7 = sshll.u32 %s1002_s6, 4  ;;  %s66_s9 = sshll.u32 %s1003_s8, 4  ;;  %s45_s7 = int_to_ptr.vmem [resolvable:$true] %s44_s7  ;;  %s67_s9 = int_to_ptr.vmem [resolvable:$true] %s66_s9 }
  0x37   :  { %s921_s13 = scalar_lea.hbm %s1124_s2, 32 }
  0x38   :  { %p922_p10 = scmp.ne.s32.totalorder %s1124_s2, %s921_s13  ;;  %p925_p11 = scmp.lt.u32.totalorder %s921_s13, %s1124_s2 }
  0x3a   :  { %p927_p12 = pnand %p925_p11, %p922_p10 }
  0x3c   :  { %930 = shalt.err (!%p927_p12)
}
  0x3d   :  { %s931_s0 = scalar_lea.vmem %s45_s7, 32  ;;  %p936_p0 = scmp.lt.s32.totalorder %s45_s7, %s45_s7 }
  0x3e   :  { %p932_p13 = scmp.ne.s32.totalorder %s45_s7, %s931_s0  ;;  %p937_p1 = scmp.lt.s32.totalorder %s931_s0, %s931_s0 }
  0x40   :  { %p938_p2 = por %p937_p1, %p936_p0 }
  0x42   :  { %p939_p3 = pnand %p938_p2, %p932_p13 }
  0x44   :  { %942 = shalt.err (!%p939_p3)
}
  0x45   :  { %47 = dma.hbm_to_vmem [thread:$0]  %s1124_s2, 32, %s45_s7, [#allocation7]  }
  0x46   :  { %s943_s20 = scalar_lea.hbm %s1126_s4, 32 }
  0x47   :  { %p944_p4 = scmp.ne.s32.totalorder %s1126_s4, %s943_s20  ;;  %p947_p5 = scmp.lt.u32.totalorder %s943_s20, %s1126_s4 }
  0x49   :  { %p949_p6 = pnand %p947_p5, %p944_p4 }
  0x4b   :  { %952 = shalt.err (!%p949_p6)
}
  0x4c   :  { %s953_s25 = scalar_lea.vmem %s67_s9, 32  ;;  %p958_p8 = scmp.lt.s32.totalorder %s67_s9, %s67_s9 }
  0x4d   :  { %p954_p7 = scmp.ne.s32.totalorder %s67_s9, %s953_s25  ;;  %p959_p9 = scmp.lt.s32.totalorder %s953_s25, %s953_s25 }
  0x4f   :  { %p960_p10 = por %p959_p9, %p958_p8 }
  0x51   :  { %p961_p11 = pnand %p960_p10, %p954_p7 }
  0x53   :  { %964 = shalt.err (!%p961_p11)
}
  0x54   :  { %69 = dma.hbm_to_vmem [thread:$0]  %s1126_s4, 32, %s67_s9, [#allocation10]  }
  0x55   :  { %987 = dma.done.wait [#allocation4], 256  }
  0x56   :  { %988 = vsyncadd [#allocation4], 4294967040 }
  0x57   :  { %989 = dma.done.wait [#allocation7], 2080  }
  0x58   :  { %990 = vsyncadd [#allocation7], 4294965216 }
  0x59   :  { %991 = dma.done.wait [#allocation10], 4128  }
  0x5a   :  { %992 = vsyncadd [#allocation10], 4294963168  ;;  %v1004_v0 = vmov 0   ;;  %v773_v1 = vld [vmem:[#allocation6 + $0x4] ss:$8 sps:$4 sm:$0xff]   ;;  %v797_v17 = vld [vmem:[#allocation3] sm:$0xff]   ;;  %v277_v54 = vlaneseq }
  0x5b   :  { %239 = vmatprep.mubr.bf16.mxu0 %v1004_v0  ;;  %v775_v2 = vld [vmem:[#allocation6] ss:$8 sps:$4 sm:$0xff]   ;;  %207 = vmatprep.subr.bf16.mxu0 %v773_v1  ;;  %v776_v3 = vld [vmem:[#allocation6 + $0x14] ss:$8 sps:$4 sm:$0xff]   ;;  %v778_v4 = vld [vmem:[#allocation6 + $0x10] ss:$8 sps:$4 sm:$0xff]  }
  0x5c   :  { %208 = vmatpush1.bf16.msra.mxu0 %v775_v2  ;;  %v779_v5 = vld [vmem:[#allocation6 + $0x24] ss:$8 sps:$4 sm:$0xff]   ;;  %v781_v6 = vld [vmem:[#allocation6 + $0x20] ss:$8 sps:$4 sm:$0xff]   ;;  %v782_v7 = vld [vmem:[#allocation6 + $0x34] ss:$8 sps:$4 sm:$0xff]  }
  0x5d   :  { %209 = vmatprep.subr.bf16.mxu0 %v776_v3  ;;  %v784_v8 = vld [vmem:[#allocation6 + $0x30] ss:$8 sps:$4 sm:$0xff]   ;;  %v785_v9 = vld [vmem:[#allocation6 + $0x44] ss:$8 sps:$4 sm:$0xff]   ;;  %v787_v10 = vld [vmem:[#allocation6 + $0x40] ss:$8 sps:$4 sm:$0xff]  }
  0x5e   :  { %v788_v11 = vld [vmem:[#allocation6 + $0x54] ss:$8 sps:$4 sm:$0xff]   ;;  %v790_v12 = vld [vmem:[#allocation6 + $0x50] ss:$8 sps:$4 sm:$0xff]   ;;  %v791_v13 = vld [vmem:[#allocation6 + $0x64] ss:$8 sps:$4 sm:$0xff]  }
  0x5f   :  { %v793_v14 = vld [vmem:[#allocation6 + $0x60] ss:$8 sps:$4 sm:$0xff]   ;;  %v794_v15 = vld [vmem:[#allocation6 + $0x74] ss:$8 sps:$4 sm:$0xff]   ;;  %v796_v16 = vld [vmem:[#allocation6 + $0x70] ss:$8 sps:$4 sm:$0xff]  }
  0x60   :  { %210 = vmatpush1.bf16.msra.mxu0 %v778_v4  ;;  %v798_v18 = vld [vmem:[#allocation3 + $0x8] sm:$0xff]   ;;  %v799_v19 = vld [vmem:[#allocation9 + $0x4] ss:$8 sps:$4 sm:$0xff]   ;;  %v801_v20 = vld [vmem:[#allocation9] ss:$8 sps:$4 sm:$0xff]   ;;  %v1005_v39 = vmov 0.0  }
  0x61   :  { %211 = vmatprep.subr.bf16.mxu0 %v779_v5  ;;  %637 = vmatprep.subr.bf16.mxu1 %v799_v19  ;;  %v802_v21 = vld [vmem:[#allocation9 + $0x14] ss:$8 sps:$4 sm:$0xff]   ;;  %v804_v22 = vld [vmem:[#allocation9 + $0x10] ss:$8 sps:$4 sm:$0xff]   ;;  %v805_v23 = vld [vmem:[#allocation9 + $0x24] ss:$8 sps:$4 sm:$0xff]  }
  0x62   :  { %638 = vmatpush1.bf16.msra.mxu1 %v801_v20  ;;  %v807_v24 = vld [vmem:[#allocation9 + $0x20] ss:$8 sps:$4 sm:$0xff]   ;;  %v808_v25 = vld [vmem:[#allocation9 + $0x34] ss:$8 sps:$4 sm:$0xff]   ;;  %v810_v26 = vld [vmem:[#allocation9 + $0x30] ss:$8 sps:$4 sm:$0xff]  }
  0x63   :  { %639 = vmatprep.subr.bf16.mxu1 %v802_v21  ;;  %v811_v27 = vld [vmem:[#allocation9 + $0x44] ss:$8 sps:$4 sm:$0xff]   ;;  %v813_v28 = vld [vmem:[#allocation9 + $0x40] ss:$8 sps:$4 sm:$0xff]   ;;  %v814_v29 = vld [vmem:[#allocation9 + $0x54] ss:$8 sps:$4 sm:$0xff]  }
  0x64   :  { %212 = vmatpush1.bf16.msra.mxu0 %v781_v6  ;;  %v816_v30 = vld [vmem:[#allocation9 + $0x50] ss:$8 sps:$4 sm:$0xff]   ;;  %v817_v31 = vld [vmem:[#allocation9 + $0x64] ss:$8 sps:$4 sm:$0xff]   ;;  %v819_v32 = vld [vmem:[#allocation9 + $0x60] ss:$8 sps:$4 sm:$0xff]  }
  0x65   :  { %213 = vmatprep.subr.bf16.mxu0 %v782_v7  ;;  %v820_v33 = vld [vmem:[#allocation9 + $0x74] ss:$8 sps:$4 sm:$0xff]   ;;  %v822_v34 = vld [vmem:[#allocation9 + $0x70] ss:$8 sps:$4 sm:$0xff]   ;;  %v823_v35 = vld [vmem:[#allocation9 + $0x84] ss:$8 sps:$4 sm:$0xff]  }
  0x66   :  { %640 = vmatpush1.bf16.msra.mxu1 %v804_v22  ;;  %v825_v36 = vld [vmem:[#allocation9 + $0x80] ss:$8 sps:$4 sm:$0xff]   ;;  %v826_v37 = vld [vmem:[#allocation9 + $0x94] ss:$8 sps:$4 sm:$0xff]   ;;  %v828_v38 = vld [vmem:[#allocation9 + $0x90] ss:$8 sps:$4 sm:$0xff]  }
  0x67   :  { %641 = vmatprep.subr.bf16.mxu1 %v805_v23  ;;  %94 = vst [vmem:[#allocation2] sm:$0xf] %v1005_v39  ;;  %v829_v40 = vld [vmem:[#allocation9 + $0xa4] ss:$8 sps:$4 sm:$0xff]   ;;  %v831_v41 = vld [vmem:[#allocation9 + $0xa0] ss:$8 sps:$4 sm:$0xff]  }
  0x68   :  { %214 = vmatpush1.bf16.msra.mxu0 %v784_v8  ;;  %v832_v42 = vld [vmem:[#allocation9 + $0xb4] ss:$8 sps:$4 sm:$0xff]   ;;  %v834_v43 = vld [vmem:[#allocation9 + $0xb0] ss:$8 sps:$4 sm:$0xff]   ;;  %v835_v44 = vld [vmem:[#allocation9 + $0xc4] ss:$8 sps:$4 sm:$0xff]  }
  0x69   :  { %215 = vmatprep.subr.bf16.mxu0 %v785_v9  ;;  %v837_v45 = vld [vmem:[#allocation9 + $0xc0] ss:$8 sps:$4 sm:$0xff]   ;;  %v838_v46 = vld [vmem:[#allocation9 + $0xd4] ss:$8 sps:$4 sm:$0xff]   ;;  %v840_v47 = vld [vmem:[#allocation9 + $0xd0] ss:$8 sps:$4 sm:$0xff]  }
  0x6a   :  { %642 = vmatpush1.bf16.msra.mxu1 %v807_v24  ;;  %v841_v48 = vld [vmem:[#allocation9 + $0xe4] ss:$8 sps:$4 sm:$0xff]   ;;  %v843_v49 = vld [vmem:[#allocation9 + $0xe0] ss:$8 sps:$4 sm:$0xff]   ;;  %v844_v50 = vld [vmem:[#allocation9 + $0xf4] ss:$8 sps:$4 sm:$0xff]  }
  0x6b   :  { %643 = vmatprep.subr.bf16.mxu1 %v808_v25  ;;  %v846_v51 = vld [vmem:[#allocation9 + $0xf0] ss:$8 sps:$4 sm:$0xff]   ;;  %v1006_v52 = vmov 1966171168   ;;  %v1099_v56 = vshrl.u32 %v277_v54, 7  ;;  %vm404_vm0 = vcmask 1041409  }
  0x6c   :  { %216 = vmatpush1.bf16.msra.mxu0 %v787_v10  ;;  %v275_v53 = vunpack.c.l.s4 %v1006_v52  ;;  %v725_v57 = vld.sshfl [vmem:[#allocation8] sm:$0x11 pattern:$0x75316420]  ;;  %vm406_vm1 = vcmask 1043459   ;;  %vm408_vm2 = vcmask 1045509  }
  0x6d   :  { %217 = vmatprep.subr.bf16.mxu0 %v788_v11  ;;  %v273_v59 = vcombine.high %v725_v57, %v725_v57  ;;  %v1103_v63 = vsub.s32 0, %v1099_v56  ;;  %vm410_vm3 = vcmask 1047559   ;;  %s1008_s4 = smov [#allocation12]  }
  0x6e   :  { %644 = vmatpush1.bf16.msra.mxu1 %v810_v26  ;;  %v276_v55 = vunpack.c.0.s8 %v275_v53  ;;  %s696_s27 = sshll.u32 %s1008_s4, 4  ;;  %s697_s27 = int_to_ptr.vmem [resolvable:$true] %s696_s27 }
  0x6f   :  { %645 = vmatprep.subr.bf16.mxu1 %v811_v27  ;;  %s965_s3 = scalar_lea.vmem %s697_s27, 64  ;;  %p970_p13 = scmp.lt.s32.totalorder %s697_s27, %s697_s27 }
  0x70   :  { %218 = vmatpush1.bf16.msra.mxu0 %v790_v12  ;;  %v279_v58 = vsub.s32 %v276_v55, %v1099_v56  ;;  %p966_p12 = scmp.ne.s32.totalorder %s697_s27, %s965_s3  ;;  %p971_p0 = scmp.lt.s32.totalorder %s965_s3, %s965_s3 }
  0x71   :  { %219 = vmatprep.subr.bf16.mxu0 %v791_v13 }
  0x72   :  { %646 = vmatpush1.bf16.msra.mxu1 %v813_v28  ;;  %v280_v60 = vrot.slane %v725_v57, %v279_v58  ;;  %v287_v61 = vrot.slane %v273_v59, %v279_v58  ;;  %p972_p1 = por %p971_p0, %p970_p13 }
  0x73   :  { %647 = vmatprep.subr.bf16.mxu1 %v814_v29 }
  0x74   :  { %220 = vmatpush1.bf16.msra.mxu0 %v793_v14  ;;  %v289_v62 = vpack.i.b16 %v280_v60, %v280_v60  ;;  %p973_p2 = pnand %p972_p1, %p966_p12 }
  0x75   :  { %221 = vmatprep.subr.bf16.mxu0 %v794_v15 }
  0x76   :  { %648 = vmatpush1.bf16.msra.mxu1 %v816_v30  ;;  %v294_v3 = vrot.slane %v289_v62, %v1103_v63 }
  0x77   :  { %649 = vmatprep.subr.bf16.mxu1 %v817_v31 }
  0x78   :  { %222 = vmatpush1.bf16.msra.mxu0 %v796_v16 }
  0x7a   :  { %650 = vmatpush1.bf16.msra.mxu1 %v819_v32 }
  0x7b   :  { %240 = vmatmul.mubr.bf16.vlgmr.msra.gmra.mrb[0].mxu0 %v797_v17  ;;  %651 = vmatprep.subr.bf16.mxu1 %v820_v33 }
  0x7c   :  { %249 = vmatprep.mubr.bf16.mxu0 %v1004_v0  ;;  %v296_v0 = vpack.i.b16 %v287_v61, %v287_v61 }
  0x7e   :  { %652 = vmatpush1.bf16.msra.mxu1 %v822_v34  ;;  %v301_v5 = vrot.slane %v296_v0, %v1103_v63 }
  0x7f   :  { %653 = vmatprep.subr.bf16.mxu1 %v823_v35 }
  0x82   :  { %654 = vmatpush1.bf16.msra.mxu1 %v825_v36 }
  0x83   :  { %250 = vmatmul.mubr.bf16.gmra.mrb[4].mxu0 %v798_v18  ;;  %655 = vmatprep.subr.bf16.mxu1 %v826_v37 }
  0x86   :  { %656 = vmatpush1.bf16.msra.mxu1 %v828_v38 }
  0x87   :  { %657 = vmatprep.subr.bf16.mxu1 %v829_v40 }
  0x8a   :  { %658 = vmatpush1.bf16.msra.mxu1 %v831_v41 }
  0x8b   :  { %659 = vmatprep.subr.bf16.mxu1 %v832_v42 }
  0x8e   :  { %660 = vmatpush1.bf16.msra.mxu1 %v834_v43 }
  0x8f   :  { %661 = vmatprep.subr.bf16.mxu1 %v835_v44 }
  0x92   :  { %662 = vmatpush1.bf16.msra.mxu1 %v837_v45 }
  0x93   :  { %663 = vmatprep.subr.bf16.mxu1 %v838_v46 }
  0x96   :  { %664 = vmatpush1.bf16.msra.mxu1 %v840_v47 }
  0x97   :  { %665 = vmatprep.subr.bf16.mxu1 %v841_v48 }
  0x9a   :  { %666 = vmatpush1.bf16.msra.mxu1 %v843_v49 }
  0x9b   :  { %667 = vmatprep.subr.bf16.mxu1 %v844_v50 }
  0x9e   :  { %668 = vmatpush1.bf16.msra.mxu1 %v846_v51 }
 0x14e   :  { %v241_v1 = vpop.f32.mrb[0].mxu0 }
 0x14f   :  { %v243_v2 = vpop.f32.mrb[1].mxu0 }
 0x150   :  { %v245_v4 = vpop.f32.mrb[2].mxu0 }
 0x151   :  { %v260_v6 = vpack.c.bf16 %v245_v4, %v241_v1  ;;  %v247_v7 = vpop.f32.mrb[3].mxu0 }
 0x152   :  { %v261_v8 = vpack.c.bf16 %v247_v7, %v243_v2 }
 0x153   :  { %v302_v9 = vadd.bf16 %v294_v3, %v260_v6 }
 0x154   :  { %v303_v10 = vadd.bf16 %v301_v5, %v261_v8 }
 0x155   :  { %v306_v11 = vmul.bf16 %v302_v9, %v302_v9 }
 0x156   :  { %v307_v12 = vmul.bf16 %v303_v10, %v303_v10  ;;  %v251_v13 = vpop.f32.mrb[4].mxu0 }
 0x157   :  { %v310_v14 = vmul.bf16 %v306_v11, %v302_v9  ;;  %v253_v15 = vpop.f32.mrb[5].mxu0 }
 0x158   :  { %v311_v16 = vmul.bf16 %v307_v12, %v303_v10  ;;  %v255_v17 = vpop.f32.mrb[6].mxu0 }
 0x159   :  { %v314_v18 = vmul.bf16 1027030327, %v310_v14  ;;  %v262_v19 = vpack.c.bf16 %v255_v17, %v251_v13  ;;  %v257_v20 = vpop.f32.mrb[7].mxu0 }
 0x15a   :  { %v315_v21 = vmul.bf16 1027030327, %v311_v16  ;;  %v263_v22 = vpack.c.bf16 %v257_v20, %v253_v15 }
 0x15b   :  { %v318_v23 = vadd.bf16 %v314_v18, %v302_v9  ;;  %v304_v24 = vadd.bf16 %v294_v3, %v262_v19 }
 0x15c   :  { %v319_v25 = vadd.bf16 %v315_v21, %v303_v10  ;;  %v305_v26 = vadd.bf16 %v301_v5, %v263_v22 }
 0x15d   :  { %v322_v27 = vmul.bf16 1061961548, %v318_v23  ;;  %v308_v28 = vmul.bf16 %v304_v24, %v304_v24 }
 0x15e   :  { %v323_v29 = vmul.bf16 1061961548, %v319_v25  ;;  %v309_v30 = vmul.bf16 %v305_v26, %v305_v26 }
 0x15f   :  { %847 = vtanh.bf16 %v322_v27  ;;  %v312_v31 = vmul.bf16 %v308_v28, %v304_v24 }
 0x160   :  { %849 = vtanh.bf16 %v323_v29  ;;  %v313_v32 = vmul.bf16 %v309_v30, %v305_v26 }
 0x161   :  { %v316_v33 = vmul.bf16 1027030327, %v312_v31 }
 0x162   :  { %v317_v34 = vmul.bf16 1027030327, %v313_v32 }
 0x163   :  { %v320_v35 = vadd.bf16 %v316_v33, %v304_v24 }
 0x164   :  { %v321_v36 = vadd.bf16 %v317_v34, %v305_v26 }
 0x165   :  { %v324_v37 = vmul.bf16 1061961548, %v320_v35 }
 0x166   :  { %v325_v38 = vmul.bf16 1061961548, %v321_v36 }
 0x167   :  { %851 = vtanh.bf16 %v324_v37 }
 0x168   :  { %853 = vtanh.bf16 %v325_v38 }
 0x16a   :  { %v848_v39 = vpop.eup %847 }
 0x16b   :  { %v850_v40 = vpop.eup %849  ;;  %v330_v41 = vadd.bf16 1065369472, %v848_v39  ;;  %v350_v39 = vld [vmem:[#allocation2] sm:$0xf] }
 0x16c   :  { %v331_v42 = vadd.bf16 1065369472, %v850_v40 }
 0x16d   :  { %v334_v43 = vmul.bf16 1056980736, %v330_v41 }
 0x16e   :  { %v335_v44 = vmul.bf16 1056980736, %v331_v42 }
 0x16f   :  { %v338_v45 = vmul.bf16 %v334_v43, %v302_v9 }
 0x170   :  { %v339_v46 = vmul.bf16 %v335_v44, %v303_v10 }
 0x171   :  { %v342_v47 = vunpack.c.l.bf16 %v338_v45  ;;  %v344_v48 = vunpack.c.h.bf16 %v338_v45 }
 0x172   :  { %v852_v49 = vpop.eup %851  ;;  %v343_v50 = vunpack.c.l.bf16 %v339_v46  ;;  %v345_v51 = vunpack.c.h.bf16 %v339_v46 }
 0x173   :  { %v854_v52 = vpop.eup %853  ;;  %v351_v53 = vadd.f32 %v344_v48, %v342_v47  ;;  %v332_v54 = vadd.bf16 1065369472, %v852_v49 }
 0x174   :  { %v358_v55 = vadd.f32 %v345_v51, %v343_v50  ;;  %v333_v57 = vadd.bf16 1065369472, %v854_v52  ;;  %v465_v50 = vld [vmem:[#allocation11] sm:$0x3]  ;;  %v473_v51 = vsub.s32 1, %v1099_v56 }
 0x175   :  { %v352_v58 = vrot.slane %v351_v53, 4  ;;  %v336_v59 = vmul.bf16 1056980736, %v332_v54  ;;  %v470_v52 = vrot.slane %v465_v50, %v1103_v63 }
 0x176   :  { %v359_v60 = vrot.slane %v358_v55, 4  ;;  %v337_v61 = vmul.bf16 1056980736, %v333_v57 }
 0x177   :  { %v353_v62 = vadd.f32 %v352_v58, %v351_v53  ;;  %v340_v0 = vmul.bf16 %v336_v59, %v304_v24  ;;  %v1007_v24 = vmov 1983009808   ;;  %v474_v53 = vrot.slane %v465_v50, %v473_v51 }
 0x178   :  { %v360_v1 = vadd.f32 %v359_v60, %v358_v55  ;;  %v341_v2 = vmul.bf16 %v337_v61, %v305_v26  ;;  %v385_v25 = vunpack.c.l.s4 %v1007_v24 }
 0x179   :  { %v354_v3 = vrot.slane %v353_v62, 2  ;;  %v346_v4 = vunpack.c.l.bf16 %v340_v0  ;;  %v348_v5 = vunpack.c.h.bf16 %v340_v0 }
 0x17a   :  { %v361_v6 = vrot.slane %v360_v1, 2  ;;  %v347_v7 = vunpack.c.l.bf16 %v341_v2  ;;  %v349_v8 = vunpack.c.h.bf16 %v341_v2  ;;  %v386_v30 = vunpack.c.0.s8 %v385_v25 }
 0x17b   :  { %v365_v9 = vadd.f32 %v348_v5, %v346_v4  ;;  %v355_v10 = vadd.f32 %v354_v3, %v353_v62 }
 0x17c   :  { %v372_v11 = vadd.f32 %v349_v8, %v347_v7  ;;  %v362_v12 = vadd.f32 %v361_v6, %v360_v1  ;;  %v389_v33 = vsub.s32 %v386_v30, %v1099_v56 }
 0x17d   :  { %v366_v13 = vrot.slane %v365_v9, 4  ;;  %v356_v14 = vrot.slane %v355_v10, 1 }
 0x17e   :  { %v373_v15 = vrot.slane %v372_v11, 4  ;;  %v363_v16 = vrot.slane %v362_v12, 1 }
 0x17f   :  { %v367_v17 = vadd.f32 %v366_v13, %v365_v9  ;;  %v357_v18 = vadd.f32 %v356_v14, %v355_v10 }
 0x180   :  { %v374_v19 = vadd.f32 %v373_v15, %v372_v11  ;;  %v364_v20 = vadd.f32 %v363_v16, %v362_v12 }
 0x181   :  { %v368_v21 = vrot.slane %v367_v17, 2 }
 0x182   :  { %v375_v22 = vrot.slane %v374_v19, 2  ;;  %v383_v23 = vcombine.low %v357_v18, %v364_v20 }
 0x183   :  { %v369_v26 = vadd.f32 %v368_v21, %v367_v17 }
 0x184   :  { %v376_v27 = vadd.f32 %v375_v22, %v374_v19  ;;  %v390_v36 = vrot.slane %v383_v23, %v389_v33 }
 0x185   :  { %v370_v28 = vrot.slane %v369_v26, 1 }
 0x186   :  { %v377_v29 = vrot.slane %v376_v27, 1 }
 0x187   :  { %v371_v31 = vadd.f32 %v370_v28, %v369_v26 }
 0x188   :  { %v378_v32 = vadd.f32 %v377_v29, %v376_v27 }
 0x18a   :  { %v391_v34 = vcombine.low %v371_v31, %v378_v32 }
 0x18c   :  { %v398_v35 = vrot.slane %v391_v34, %v389_v33 }
 0x18e   :  { %v403_v37 = vrot.slane %v398_v35, 7 }
 0x190   :  { %v405_v38 = vsel %vm404_vm0, %v403_v37, %v390_v36 }
 0x191   :  { %v407_v40 = vsel %vm406_vm1, %v403_v37, %v405_v38 }
 0x192   :  { %v409_v41 = vsel %vm408_vm2, %v403_v37, %v407_v40 }
 0x193   :  { %v411_v42 = vsel %vm410_vm3, %v403_v37, %v409_v41 }
 0x194   :  { %v413_v43 = vadd.f32 %v411_v42, %v350_v39 }
 0x196   :  { %414 = vst [vmem:[#allocation2] sm:$0xf] %v413_v43 }
 0x19d   :  { %v418_v44 = vld [vmem:[#allocation2] sm:$0xf] }
 0x19e   :  { %v419_v45 = vmul.f32 0.0625, %v418_v44 }
 0x1a0   :  { %v427_v46 = vrot.slane %v419_v45, %v389_v33 }
 0x1a2   :  { %v428_v47 = vcombine.high %v427_v46, %v427_v46  ;;  %v431_v49 = vpack.c.bf16 %v427_v46, %v427_v46 }
 0x1a4   :  { %v432_v48 = vpack.c.bf16 %v428_v47, %v428_v47 }
 0x1a6   :  { %669 = vmatprep.mubr.bf16.mxu1 %v432_v48 }
 0x1a7   :  { %670 = vmatmul.mubr.bf16.vlgmr.msra.gmra.mrb[0].mxu1 %v431_v49 }
 0x27a   :  { %v671_v54 = vpop.f32.mrb[0].mxu1 }
 0x27b   :  { %v672_v55 = vadd.f32 %v671_v54, %v470_v52  ;;  %v673_v57 = vpop.f32.mrb[1].mxu1 }
 0x27c   :  { %v674_v58 = vadd.f32 %v673_v57, %v474_v53  ;;  %v675_v59 = vpop.f32.mrb[2].mxu1 }
 0x27d   :  { %v676_v60 = vpop.f32.mrb[3].mxu1 }
 0x27e   :  { %v680_v61 = vcombine.low %v672_v55, %v674_v58 }
 0x280   :  { %758 = vst.sshfl [vmem:[#allocation12] sm:$0x33 pattern:$0x76325410] %v680_v61 }
 0x281   :  { %976 = shalt.err (!%p973_p2)
}
 0x282   :  { %s977_s30 = scalar_lea.hbm %s1127_s5, 64 }
 0x283   :  { %p978_p3 = scmp.ne.s32.totalorder %s1127_s5, %s977_s30  ;;  %p981_p4 = scmp.lt.u32.totalorder %s977_s30, %s1127_s5 }
 0x285   :  { %p983_p5 = pnand %p981_p4, %p978_p3 }
 0x287   :  { %986 = shalt.err (!%p983_p5)
}
 0x288   :  { %699 = dma.vmem_to_hbm [thread:$0]  %s697_s27, 64, %s1127_s5, [#allocation5]  }
 0x289   :  { %993 = dma.done.wait [#allocation5], 64  }
 0x28a   :  { %994 = vsyncadd [#allocation5], 4294967232 }
 0x28b   :  { %703 = vsyncpa [#allocation4], 1 }
 0x28c   :  { %704 = vsyncpa [#allocation7], 1 }
 0x28d   :  { %705 = vsyncpa [#allocation10], 1 }
 0x28e   :  { %706 = vsyncpa [#allocation5], 1 }

</bundles_post_ra>
